<compile_context>
chip_gen: v6e
topology: v6e:2x2x1
jax: 0.10.0
libtpu: 0.0.40
codegen_flags: <defaults>
</compile_context>

<pallas_src>
import jax
import jax.numpy as jnp
from jax.experimental import pallas as pl
from jax.experimental.pallas import tpu as pltpu


# ---------------------------------------------------------------------------
# Kernel
# ---------------------------------------------------------------------------

def _log_softmax_last(y):
    m = jnp.max(y, axis=-1, keepdims=True)
    z = y - m
    lse = jnp.log(jnp.sum(jnp.exp(z), axis=-1, keepdims=True))
    return z - lse


def decoder_kernel(w_ref, m1_ref, m2_ref, m3_ref, mask_ref, p1_ref, p2_ref,
                   acc1_ref, acc2_ref):
    d = pl.program_id(1)

    @pl.when(d == 0)
    def _():
        acc1_ref[...] = jnp.zeros_like(acc1_ref)
        acc2_ref[...] = jnp.zeros_like(acc2_ref)

    f32 = jnp.float32
    m1 = m1_ref[...].astype(f32)          # (Bt, Dt, L)
    m2 = m2_ref[...].astype(f32)
    m3 = m3_ref[...].astype(f32)
    w = w_ref[...]                        # (4, Dt, 1), f32

    # 1x1 conv over channels == weighted sum over D: VPU broadcast-multiply
    # followed by a sublane (D) reduction.  No MXU, no relayout.
    # TODO(synk): on v6e/v7x the multiplies could stay bf16 (f32-accumulate
    # only); kept f32 everywhere since v5e has no bf16 VPU path.
    acc1_ref[...] += jnp.sum(m1 * w[0] + m2 * w[1], axis=1)   # (Bt, L)
    acc2_ref[...] += jnp.sum(m1 * w[2] + m3 * w[3], axis=1)

    @pl.when(d == pl.num_programs(1) - 1)
    def _():
        mask = mask_ref[...]              # (Bt, L), f32
        neg = (1.0 - mask) * (-1e30)      # shared additive mask term
        y1 = acc1_ref[...] * mask + neg
        y2 = acc2_ref[...] * mask + neg
        p1_ref[...] = _log_softmax_last(y1)
        p2_ref[...] = _log_softmax_last(y2)


# ---------------------------------------------------------------------------
# Block sizing (generation-aware, padded-tile accounting)
# ---------------------------------------------------------------------------

_SUBLANE = {1: 32, 2: 16, 4: 8}           # itemsize -> sublane tile rows


def _round_up(x, m):
    return ((x + m - 1) // m) * m


def _vmem_budget():
    """Returns (working-set budget, scoped vmem limit) in bytes."""
    phys = 64 << 20                                   # conservative (v7x per-TC)
    try:
        info = pltpu.get_tpu_info()
        phys = int(getattr(info, "vmem_capacity_bytes", phys))
    except Exception:
        pass
    limit = min(64 << 20, (phys * 3) // 4)            # 64 MiB v5e/v6e, 48 MiB v7x
    return limit - (4 << 20), limit                   # ~4 MiB headroom


def _choose_blocks(B, D, L, itemsize):
    """Pick (block_b, block_d, vmem_limit_bytes)."""
    sub = _SUBLANE.get(itemsize, 8)
    budget, vmem_limit = _vmem_budget()
    Lp = _round_up(L, 128)

    def per_row_bytes(bd):
        dp = _round_up(bd, sub)
        in_b = 3 * 2 * dp * Lp * itemsize             # 3 inputs x 2 buffers
        vec_b = (2 + 2 * 2) * Lp * 4                   # mask (x2) + 2 outs (x2 each)
        acc_b = 2 * Lp * 4                             # y1/y2 scratch
        return in_b + vec_b + acc_b

    fixed = 2 * 4 * _round_up(D, 8) * 128 * 4          # W (4, D, 1) x 2 buffers
    avail = max(budget - fixed, 1 << 20)

    # Channel (D) blocking only when even min(B, 8) full-D rows overflow.
    block_d = D
    min_rows = min(B, 8)
    if min_rows * per_row_bytes(D) > avail:
        divisors = [d for d in range(sub, D, sub) if D % d == 0]
        for cand in sorted(divisors, reverse=True):
            if min_rows * per_row_bytes(cand) <= avail:
                block_d = cand
                break
        else:
            block_d = divisors[0] if divisors else D   # best effort

    bt = max(1, avail // per_row_bytes(block_d))
    total_in_bytes = 3 * B * D * L * itemsize
    if B > 8 and total_in_bytes >= (4 << 20):
        bt = min(bt, -(-B // 2))                       # >= 2 parallel blocks (v7x megacore)
    if bt >= B:
        block_b = B                                    # whole batch, single block
    else:
        bt = max(8, (bt // 8) * 8)                     # mask/out blocks need mult-of-8 rows
        block_b = bt
        # Prefer an exact divisor of B near the target: avoids a partial tail.
        for cand in range(bt, max(bt // 2, 8) - 1, -8):
            if B % cand == 0:
                block_b = cand
                break
    return int(block_b), int(block_d), int(vmem_limit)


# ---------------------------------------------------------------------------
# Wrapper
# ---------------------------------------------------------------------------

def qanet_decoder(M1, M2, M3, mask, w1, w2, *, block_b=None, block_d=None):
    """M1/M2/M3: (B, D, L) f32 or bf16; mask: (B, L); w1/w2: (2D,) f32.

    Returns (log_p1, log_p2), each (B, L) f32.
    """
    B, D, L = M1.shape
    assert M2.shape == (B, D, L) and M3.shape == (B, D, L)
    assert mask.shape == (B, L)
    assert w1.shape == (2 * D,) and w2.shape == (2 * D,)

    f32 = jnp.float32
    itemsize = jnp.dtype(M1.dtype).itemsize
    auto_b, auto_d, vmem_limit = _choose_blocks(B, D, L, itemsize)
    block_b = int(min(auto_b if block_b is None else block_b, B))
    block_d = int(min(auto_d if block_d is None else block_d, D))
    assert D % block_d == 0, "block_d must divide D"

    nb = -(-B // block_b)                 # partial tail handled by Pallas masking
    nd = D // block_d

    # Rows: [w1|M1, w1|M2, w2|M1, w2|M3].  (4, D, 1) so the weight broadcasts
    # over the lane (L) axis and is indexed along sublanes (D) without any
    # lane-offset slicing in the kernel.
    W = jnp.concatenate([w1, w2]).astype(f32).reshape(4, D)[:, :, None]

    w_spec = pl.BlockSpec((4, block_d, 1), lambda b, d: (0, d, 0))
    m_spec = pl.BlockSpec((block_b, block_d, L), lambda b, d: (b, d, 0))
    v_spec = pl.BlockSpec((block_b, L), lambda b, d: (b, 0))

    p1, p2 = pl.pallas_call(
        decoder_kernel,
        out_shape=(jax.ShapeDtypeStruct((B, L), f32),
                   jax.ShapeDtypeStruct((B, L), f32)),
        grid_spec=pltpu.PrefetchScalarGridSpec(
            num_scalar_prefetch=0,
            grid=(nb, nd),
            in_specs=[w_spec, m_spec, m_spec, m_spec, v_spec],
            out_specs=[v_spec, v_spec],
            scratch_shapes=[pltpu.VMEM((block_b, L), f32),
                            pltpu.VMEM((block_b, L), f32)],
        ),
        compiler_params=pltpu.CompilerParams(
            dimension_semantics=("parallel", "arbitrary"),
            vmem_limit_bytes=vmem_limit,
        ),
    )(W, M1, M2, M3, mask.astype(f32))
    return p1, p2


# ---------------------------------------------------------------------------
# Reference + self-test
# ---------------------------------------------------------------------------

def _reference(M1, M2, M3, mask, w1, w2):
    X1 = jnp.concatenate([M1, M2], axis=1).astype(jnp.float32)
    X2 = jnp.concatenate([M1, M3], axis=1).astype(jnp.float32)
    y1 = jnp.einsum('c,bcl->bl', w1, X1)
    y2 = jnp.einsum('c,bcl->bl', w2, X2)
    mask = mask.astype(jnp.float32)
    y1 = y1 * mask + (1.0 - mask) * (-1e30)
    y2 = y2 * mask + (1.0 - mask) * (-1e30)
    return jax.nn.log_softmax(y1, axis=1), jax.nn.log_softmax(y2, axis=1)


if __name__ == "__main__":
    key = jax.random.PRNGKey(0)

    def make_case(k, B, D, L, dtype=jnp.float32):
        k1, k2, k3, k4, k5, k6 = jax.random.split(k, 6)
        M1 = jax.random.normal(k1, (B, D, L), dtype=jnp.float32).astype(dtype)
        M2 = jax.random.normal(k2, (B, D, L), dtype=jnp.float32).astype(dtype)
        M3 = jax.random.normal(k3, (B, D, L), dtype=jnp.float32).astype(dtype)
        lengths = jax.random.randint(k6, (B,), 1, L + 1)
        mask = (jnp.arange(L)[None, :] < lengths[:, None]).astype(jnp.float32)
        # xavier_uniform-like init for Conv1d(2D, 1, k=1)
        bound = (6.0 / (2 * D + 1)) ** 0.5
        w1 = jax.random.uniform(k4, (2 * D,), jnp.float32, -bound, bound)
        w2 = jax.random.uniform(k5, (2 * D,), jnp.float32, -bound, bound)
        return M1, M2, M3, mask, w1, w2

    k0, k1, k2 = jax.random.split(key, 3)

    # Case 1: tiny shape consistent with the module (model_dim=32, B=2, L=16):
    # single whole-problem grid step.
    args = make_case(k0, B=2, D=32, L=16)
    p1, p2 = qanet_decoder(*args)
    jax.block_until_ready((p1, p2))
    r1, r2 = _reference(*args)
    assert p1.shape == r1.shape and p2.shape == r2.shape
    assert jnp.allclose(p1, r1, atol=1e-4, rtol=1e-4)
    assert jnp.allclose(p2, r2, atol=1e-4, rtol=1e-4)

    # Case 2: ragged batch (no padding, partial tail block) + channel (D)
    # reduction axis with scratch accumulation.
    args2 = make_case(k1, B=11, D=32, L=128)
    q1, q2 = qanet_decoder(*args2, block_b=8, block_d=16)
    jax.block_until_ready((q1, q2))
    s1, s2 = _reference(*args2)
    assert jnp.allclose(q1, s1, atol=1e-4, rtol=1e-4)
    assert jnp.allclose(q2, s2, atol=1e-4, rtol=1e-4)

    # Case 3: bf16 inputs accepted directly (f32 math in kernel).
    args3 = make_case(k2, B=4, D=32, L=256, dtype=jnp.bfloat16)
    t1, t2 = qanet_decoder(*args3)
    jax.block_until_ready((t1, t2))
    u1, u2 = _reference(*args3)
    assert jnp.allclose(t1, u1, atol=1e-3, rtol=1e-3)
    assert jnp.allclose(t2, u2, atol=1e-3, rtol=1e-3)

    print("KERNEL_OK")
</pallas_src>

<mosaic_0001>
module attributes {stable_mosaic.version = 11 : i64} {
  func.func @decoder_kernel(%arg0: i32, %arg1: i32, %arg2: memref<4x32x1xf32, #tpu.memory_space<vmem>>, %arg3: memref<2x32x16xf32, #tpu.memory_space<vmem>>, %arg4: memref<2x32x16xf32, #tpu.memory_space<vmem>>, %arg5: memref<2x32x16xf32, #tpu.memory_space<vmem>>, %arg6: memref<2x16xf32, #tpu.memory_space<vmem>>, %arg7: memref<2x16xf32, #tpu.memory_space<vmem>>, %arg8: memref<2x16xf32, #tpu.memory_space<vmem>>, %arg9: memref<2x16xf32, #tpu.memory_space<vmem>>, %arg10: memref<2x16xf32, #tpu.memory_space<vmem>>) attributes {dimension_semantics = [#tpu.dimension_semantics<parallel>, #tpu.dimension_semantics<arbitrary>], iteration_bounds = array<i64: 1, 1>, scalar_prefetch = 0 : i64, scratch_operands = 2 : i64, tpu.core_type = #tpu.core_type<tc>, window_params = [{transform_indices = @transform_0, window_bounds = array<i64: 4, 32, 1>}, {transform_indices = @transform_1, window_bounds = array<i64: 2, 32, 16>}, {transform_indices = @transform_2, window_bounds = array<i64: 2, 32, 16>}, {transform_indices = @transform_3, window_bounds = array<i64: 2, 32, 16>}, {transform_indices = @transform_4, window_bounds = array<i64: 2, 16>}, {transform_indices = @transform_5, window_bounds = array<i64: 2, 16>}, {transform_indices = @transform_6, window_bounds = array<i64: 2, 16>}]} {
    %c0_i32 = arith.constant 0 : i32
    %0 = arith.cmpi eq, %arg1, %c0_i32 : i32
    %1 = arith.extui %0 : i1 to i32
    %c0_i32_0 = arith.constant 0 : i32
    %2 = arith.cmpi ne, %1, %c0_i32_0 : i32
    scf.if %2 {
      %cst_23 = arith.constant 0.000000e+00 : f32
      %40 = vector.broadcast %cst_23 : f32 to vector<2x16xf32>
      %c0_24 = arith.constant 0 : index
      %c0_25 = arith.constant 0 : index
      %41 = vector.load %arg9[%c0_24, %c0_25] : memref<2x16xf32, #tpu.memory_space<vmem>>, vector<2x16xf32>
      tpu.vector_store %arg9[%c0_24, %c0_25], %40 {strides = array<i32>} : memref<2x16xf32, #tpu.memory_space<vmem>>, vector<2x16xf32>,
      %cst_26 = arith.constant 0.000000e+00 : f32
      %42 = vector.broadcast %cst_26 : f32 to vector<2x16xf32>
      %c0_27 = arith.constant 0 : index
      %c0_28 = arith.constant 0 : index
      %43 = vector.load %arg10[%c0_27, %c0_28] : memref<2x16xf32, #tpu.memory_space<vmem>>, vector<2x16xf32>
      tpu.vector_store %arg10[%c0_27, %c0_28], %42 {strides = array<i32>} : memref<2x16xf32, #tpu.memory_space<vmem>>, vector<2x16xf32>,
    } else {
    }
    %c0 = arith.constant 0 : index
    %c0_1 = arith.constant 0 : index
    %c0_2 = arith.constant 0 : index
    %3 = vector.load %arg3[%c0, %c0_1, %c0_2] : memref<2x32x16xf32, #tpu.memory_space<vmem>>, vector<2x32x16xf32>
    %c0_3 = arith.constant 0 : index
    %c0_4 = arith.constant 0 : index
    %c0_5 = arith.constant 0 : index
    %4 = vector.load %arg4[%c0_3, %c0_4, %c0_5] : memref<2x32x16xf32, #tpu.memory_space<vmem>>, vector<2x32x16xf32>
    %c0_6 = arith.constant 0 : index
    %c0_7 = arith.constant 0 : index
    %c0_8 = arith.constant 0 : index
    %5 = vector.load %arg5[%c0_6, %c0_7, %c0_8] : memref<2x32x16xf32, #tpu.memory_space<vmem>>, vector<2x32x16xf32>
    %c0_9 = arith.constant 0 : index
    %c0_10 = arith.constant 0 : index
    %c0_11 = arith.constant 0 : index
    %6 = vector.load %arg2[%c0_9, %c0_10, %c0_11] : memref<4x32x1xf32, #tpu.memory_space<vmem>>, vector<4x32x1xf32>
    %c0_12 = arith.constant 0 : index
    %c0_13 = arith.constant 0 : index
    %7 = vector.load %arg9[%c0_12, %c0_13] : memref<2x16xf32, #tpu.memory_space<vmem>>, vector<2x16xf32>
    %8 = vector.extract_strided_slice %6 {offsets = [0, 0, 0], sizes = [1, 32, 1], strides = [1, 1, 1]} : vector<4x32x1xf32> to vector<1x32x1xf32>
    %9 = vector.shape_cast %8 : vector<1x32x1xf32> to vector<32x1xf32>
    %10 = vector.shape_cast %9 : vector<32x1xf32> to vector<1x32x1xf32>
    %11 = vector.broadcast %10 : vector<1x32x1xf32> to vector<2x32x16xf32>
    %12 = arith.mulf %3, %11 : vector<2x32x16xf32>
    %13 = vector.extract_strided_slice %6 {offsets = [1, 0, 0], sizes = [1, 32, 1], strides = [1, 1, 1]} : vector<4x32x1xf32> to vector<1x32x1xf32>
    %14 = vector.shape_cast %13 : vector<1x32x1xf32> to vector<32x1xf32>
    %15 = vector.shape_cast %14 : vector<32x1xf32> to vector<1x32x1xf32>
    %16 = vector.broadcast %15 : vector<1x32x1xf32> to vector<2x32x16xf32>
    %17 = arith.mulf %4, %16 : vector<2x32x16xf32>
    %18 = arith.addf %12, %17 : vector<2x32x16xf32>
    %cst = arith.constant dense<0.000000e+00> : vector<2x16xf32>
    %19 = vector.multi_reduction <add>, %18, %cst [1] : vector<2x32x16xf32> to vector<2x16xf32>
    %20 = arith.addf %7, %19 : vector<2x16xf32>
    %c0_14 = arith.constant 0 : index
    %c0_15 = arith.constant 0 : index
    %21 = vector.load %arg9[%c0_14, %c0_15] : memref<2x16xf32, #tpu.memory_space<vmem>>, vector<2x16xf32>
    tpu.vector_store %arg9[%c0_14, %c0_15], %20 {strides = array<i32>} : memref<2x16xf32, #tpu.memory_space<vmem>>, vector<2x16xf32>,
    %c0_16 = arith.constant 0 : index
    %c0_17 = arith.constant 0 : index
    %22 = vector.load %arg10[%c0_16, %c0_17] : memref<2x16xf32, #tpu.memory_space<vmem>>, vector<2x16xf32>
    %23 = vector.extract_strided_slice %6 {offsets = [2, 0, 0], sizes = [1, 32, 1], strides = [1, 1, 1]} : vector<4x32x1xf32> to vector<1x32x1xf32>
    %24 = vector.shape_cast %23 : vector<1x32x1xf32> to vector<32x1xf32>
    %25 = vector.shape_cast %24 : vector<32x1xf32> to vector<1x32x1xf32>
    %26 = vector.broadcast %25 : vector<1x32x1xf32> to vector<2x32x16xf32>
    %27 = arith.mulf %3, %26 : vector<2x32x16xf32>
    %28 = vector.extract_strided_slice %6 {offsets = [3, 0, 0], sizes = [1, 32, 1], strides = [1, 1, 1]} : vector<4x32x1xf32> to vector<1x32x1xf32>
    %29 = vector.shape_cast %28 : vector<1x32x1xf32> to vector<32x1xf32>
    %30 = vector.shape_cast %29 : vector<32x1xf32> to vector<1x32x1xf32>
    %31 = vector.broadcast %30 : vector<1x32x1xf32> to vector<2x32x16xf32>
    %32 = arith.mulf %5, %31 : vector<2x32x16xf32>
    %33 = arith.addf %27, %32 : vector<2x32x16xf32>
    %cst_18 = arith.constant dense<0.000000e+00> : vector<2x16xf32>
    %34 = vector.multi_reduction <add>, %33, %cst_18 [1] : vector<2x32x16xf32> to vector<2x16xf32>
    %35 = arith.addf %22, %34 : vector<2x16xf32>
    %c0_19 = arith.constant 0 : index
    %c0_20 = arith.constant 0 : index
    %36 = vector.load %arg10[%c0_19, %c0_20] : memref<2x16xf32, #tpu.memory_space<vmem>>, vector<2x16xf32>
    tpu.vector_store %arg10[%c0_19, %c0_20], %35 {strides = array<i32>} : memref<2x16xf32, #tpu.memory_space<vmem>>, vector<2x16xf32>,
    %c0_i32_21 = arith.constant 0 : i32
    %37 = arith.cmpi eq, %arg1, %c0_i32_21 : i32
    %38 = arith.extui %37 : i1 to i32
    %c0_i32_22 = arith.constant 0 : i32
    %39 = arith.cmpi ne, %38, %c0_i32_22 : i32
    scf.if %39 {
      %c0_23 = arith.constant 0 : index
      %c0_24 = arith.constant 0 : index
      %40 = vector.load %arg6[%c0_23, %c0_24] : memref<2x16xf32, #tpu.memory_space<vmem>>, vector<2x16xf32>
      %cst_25 = arith.constant 1.000000e+00 : f32
      %41 = vector.broadcast %cst_25 : f32 to vector<2x16xf32>
      %42 = arith.subf %41, %40 : vector<2x16xf32>
      %cst_26 = arith.constant -1.000000e+30 : f32
      %43 = vector.broadcast %cst_26 : f32 to vector<2x16xf32>
      %44 = arith.mulf %42, %43 : vector<2x16xf32>
      %c0_27 = arith.constant 0 : index
      %c0_28 = arith.constant 0 : index
      %45 = vector.load %arg9[%c0_27, %c0_28] : memref<2x16xf32, #tpu.memory_space<vmem>>, vector<2x16xf32>
      %46 = arith.mulf %45, %40 : vector<2x16xf32>
      %47 = arith.addf %46, %44 : vector<2x16xf32>
      %c0_29 = arith.constant 0 : index
      %c0_30 = arith.constant 0 : index
      %48 = vector.load %arg10[%c0_29, %c0_30] : memref<2x16xf32, #tpu.memory_space<vmem>>, vector<2x16xf32>
      %49 = arith.mulf %48, %40 : vector<2x16xf32>
      %50 = arith.addf %49, %44 : vector<2x16xf32>
      %cst_31 = arith.constant dense<0xFF800000> : vector<2xf32>
      %51 = vector.multi_reduction <maximumf>, %47, %cst_31 [1] : vector<2x16xf32> to vector<2xf32>
      %52 = vector.shape_cast %51 : vector<2xf32> to vector<2x1xf32>
      %53 = vector.broadcast %52 : vector<2x1xf32> to vector<2x16xf32>
      %54 = arith.subf %47, %53 : vector<2x16xf32>
      %55 = math.exp %54 : vector<2x16xf32>
      %cst_32 = arith.constant dense<0.000000e+00> : vector<2xf32>
      %56 = vector.multi_reduction <add>, %55, %cst_32 [1] : vector<2x16xf32> to vector<2xf32>
      %57 = vector.shape_cast %56 : vector<2xf32> to vector<2x1xf32>
      %58 = math.log %57 : vector<2x1xf32>
      %59 = vector.broadcast %58 : vector<2x1xf32> to vector<2x16xf32>
      %60 = arith.subf %54, %59 : vector<2x16xf32>
      %c0_33 = arith.constant 0 : index
      %c0_34 = arith.constant 0 : index
      %61 = vector.load %arg7[%c0_33, %c0_34] : memref<2x16xf32, #tpu.memory_space<vmem>>, vector<2x16xf32>
      tpu.vector_store %arg7[%c0_33, %c0_34], %60 {strides = array<i32>} : memref<2x16xf32, #tpu.memory_space<vmem>>, vector<2x16xf32>,
      %cst_35 = arith.constant dense<0xFF800000> : vector<2xf32>
      %62 = vector.multi_reduction <maximumf>, %50, %cst_35 [1] : vector<2x16xf32> to vector<2xf32>
      %63 = vector.shape_cast %62 : vector<2xf32> to vector<2x1xf32>
      %64 = vector.broadcast %63 : vector<2x1xf32> to vector<2x16xf32>
      %65 = arith.subf %50, %64 : vector<2x16xf32>
      %66 = math.exp %65 : vector<2x16xf32>
      %cst_36 = arith.constant dense<0.000000e+00> : vector<2xf32>
      %67 = vector.multi_reduction <add>, %66, %cst_36 [1] : vector<2x16xf32> to vector<2xf32>
      %68 = vector.shape_cast %67 : vector<2xf32> to vector<2x1xf32>
      %69 = math.log %68 : vector<2x1xf32>
      %70 = vector.broadcast %69 : vector<2x1xf32> to vector<2x16xf32>
      %71 = arith.subf %65, %70 : vector<2x16xf32>
      %c0_37 = arith.constant 0 : index
      %c0_38 = arith.constant 0 : index
      %72 = vector.load %arg8[%c0_37, %c0_38] : memref<2x16xf32, #tpu.memory_space<vmem>>, vector<2x16xf32>
      tpu.vector_store %arg8[%c0_37, %c0_38], %71 {strides = array<i32>} : memref<2x16xf32, #tpu.memory_space<vmem>>, vector<2x16xf32>,
    } else {
    }
    return
  }
  func.func @transform_0(%arg0: i32, %arg1: i32) -> (i32, i32, i32) {
    %c0_i32 = arith.constant 0 : i32
    %c0_i32_0 = arith.constant 0 : i32
    %c0_i32_1 = arith.constant 0 : i32
    return %c0_i32, %arg1, %c0_i32_0 : i32, i32, i32
  }
  func.func @transform_1(%arg0: i32, %arg1: i32) -> (i32, i32, i32) {
    %c0_i32 = arith.constant 0 : i32
    %c0_i32_0 = arith.constant 0 : i32
    return %arg0, %arg1, %c0_i32 : i32, i32, i32
  }
  func.func @transform_2(%arg0: i32, %arg1: i32) -> (i32, i32, i32) {
    %c0_i32 = arith.constant 0 : i32
    %c0_i32_0 = arith.constant 0 : i32
    return %arg0, %arg1, %c0_i32 : i32, i32, i32
  }
  func.func @transform_3(%arg0: i32, %arg1: i32) -> (i32, i32, i32) {
    %c0_i32 = arith.constant 0 : i32
    %c0_i32_0 = arith.constant 0 : i32
    return %arg0, %arg1, %c0_i32 : i32, i32, i32
  }
  func.func @transform_4(%arg0: i32, %arg1: i32) -> (i32, i32) {
    %c0_i32 = arith.constant 0 : i32
    %c0_i32_0 = arith.constant 0 : i32
    return %arg0, %c0_i32 : i32, i32
  }
  func.func @transform_5(%arg0: i32, %arg1: i32) -> (i32, i32) {
    %c0_i32 = arith.constant 0 : i32
    %c0_i32_0 = arith.constant 0 : i32
    return %arg0, %c0_i32 : i32, i32
  }
  func.func @transform_6(%arg0: i32, %arg1: i32) -> (i32, i32) {
    %c0_i32 = arith.constant 0 : i32
    %c0_i32_0 = arith.constant 0 : i32
    return %arg0, %c0_i32 : i32, i32
  }
}

</mosaic_0001>

<bundles_post_ra>
// kernel: tpu_custom_call.1
= control target key start
LH: loop header
LB: loop body
LE: loop exit
PB: predicated region body
PF: predicated region fallthrough
CT: control target
= control target key end

     0   :  { %12 = vsyncpa [#allocation5], 0  ;;  %v392_v2 = vmov 0   ;;  %s588_s0 = inlined_call_operand.vmem [shape: f32[4,32,1], index: 0, kind: input, shape index: {}]   ;;  %s589_s1 = inlined_call_operand.vmem [shape: f32[2,32,16], index: 1, kind: input, shape index: {}]   ;;  %s590_s2 = inlined_call_operand.vmem [shape: f32[2,32,16], index: 2, kind: input, shape index: {}]   ;;  %s591_s3 = inlined_call_operand.vmem [shape: f32[2,32,16], index: 3, kind: input, shape index: {}]   ;;  %s592_s4 = inlined_call_operand.vmem [shape: f32[2,16], index: 4, kind: input, shape index: {}]   ;;  %s593_s5 = inlined_call_operand.hbm [shape: f32[2,16], index: 5, kind: output, shape index: {0}]   ;;  %s594_s6 = inlined_call_operand.hbm [shape: f32[2,16], index: 6, kind: output, shape index: {1}]  }
   0x1   :  { %v59_v0 = vld [vmem:[%s588_s0 + $0x20] sm:$0xff]  ;;  %339 = vset.pattern.permute.xlu1 %v392_v2  ;;  %338 = vset.pattern.permute.xlu0 %v392_v2  ;;  %v60_v3 = vld [vmem:[%s588_s0 + $0x28] sm:$0xff] }
   0x2   :  { %v55_v1 = vld [vmem:[%s588_s0] sm:$0xff]  ;;  %102 = vperm.xlu1 %339, %v59_v0   ;;  %v56_v4 = vld [vmem:[%s588_s0 + $0x8] sm:$0xff] }
   0x3   :  { %74 = vperm.xlu0 %338, %v55_v1   ;;  %v64_v5 = vld [vmem:[%s588_s0 + $0x48] sm:$0xff]  ;;  %v63_v6 = vld [vmem:[%s588_s0 + $0x40] sm:$0xff] }
   0x6   :  { %107 = vperm.xlu1 %339, %v60_v3  }
   0x7   :  { %79 = vperm.xlu0 %338, %v56_v4  }
   0x8   :  { %13 = vsyncpa [#allocation7], 0  ;;  %v68_v7 = vld [vmem:[%s588_s0 + $0x68] sm:$0xff]  ;;  %v67_v8 = vld [vmem:[%s588_s0 + $0x60] sm:$0xff]  ;;  %vm28_vm0 = vcmask 123904   ;;  %v393_v15 = vmov 0.0  }
   0x9   :  { %v61_v9 = vld [vmem:[%s588_s0 + $0x30] sm:$0xff]  ;;  %v62_v13 = vld [vmem:[%s588_s0 + $0x38] sm:$0xff]  ;;  %29 = vst.msk [vmem:[#allocation2] sm:$0x3] %vm28_vm0, %v393_v15  ;;  %30 = vst.msk [vmem:[#allocation3] sm:$0x3] %vm28_vm0, %v393_v15 }
   0xa   :  { %179 = vperm.xlu1 %339, %v64_v5   ;;  %v57_v10 = vld [vmem:[%s588_s0 + $0x10] sm:$0xff]  ;;  %v58_v14 = vld [vmem:[%s588_s0 + $0x18] sm:$0xff]  ;;  %v39_v20 = vld [vmem:[%s590_s2] sm:$0xff]  ;;  %vm136_vm1 = vcmask 130048   ;;  %vm165_vm2 = vcmask 1041409   ;;  %s395_s27 = smov [#allocation6]  }
   0xb   :  { %174 = vperm.xlu0 %338, %v63_v6   ;;  %v69_v11 = vld [vmem:[%s588_s0 + $0x70] sm:$0xff]  ;;  %v70_v16 = vld [vmem:[%s588_s0 + $0x78] sm:$0xff]  ;;  %v43_v23 = vld [vmem:[%s590_s2 + $0x20] sm:$0xff]  ;;  %s322_s28 = sshll.u32 %s395_s27, 4  ;;  %s323_s28 = int_to_ptr.vmem [resolvable:$true] %s322_s28 }
   0xc   :  { %v65_v12 = vld [vmem:[%s588_s0 + $0x50] sm:$0xff]  ;;  %v66_v17 = vld [vmem:[%s588_s0 + $0x58] sm:$0xff]  ;;  %v31_v24 = vld [vmem:[%s589_s1] sm:$0xff] }
   0xd   :  { %v35_v25 = vld [vmem:[%s589_s1 + $0x20] sm:$0xff]  ;;  %v40_v32 = vld [vmem:[%s590_s2 + $0x8] sm:$0xff]  ;;  %v41_v47 = vld [vmem:[%s590_s2 + $0x10] sm:$0xff] }
   0xe   :  { %207 = vperm.xlu1 %339, %v68_v7   ;;  %v44_v33 = vld [vmem:[%s590_s2 + $0x28] sm:$0xff]  ;;  %v47_v46 = vld [vmem:[%s591_s3] sm:$0xff]  ;;  %v45_v48 = vld [vmem:[%s590_s2 + $0x30] sm:$0xff] }
   0xf   :  { %202 = vperm.xlu0 %338, %v67_v8   ;;  %v32_v34 = vld [vmem:[%s589_s1 + $0x8] sm:$0xff]  ;;  %v51_v49 = vld [vmem:[%s591_s3 + $0x20] sm:$0xff]  ;;  %v33_v52 = vld [vmem:[%s589_s1 + $0x10] sm:$0xff] }
  0x10   :  { %v36_v35 = vld [vmem:[%s589_s1 + $0x28] sm:$0xff]  ;;  %v37_v53 = vld [vmem:[%s589_s1 + $0x30] sm:$0xff] }
  0x11   :  { %v48_v44 = vld [vmem:[%s591_s3 + $0x8] sm:$0xff]  ;;  %v49_v62 = vld [vmem:[%s591_s3 + $0x10] sm:$0xff] }
  0x12   :  { %112 = vperm.xlu1 %339, %v61_v9   ;;  %v52_v45 = vld [vmem:[%s591_s3 + $0x28] sm:$0xff]  ;;  %v53_v63 = vld [vmem:[%s591_s3 + $0x30] sm:$0xff] }
  0x13   :  { %84 = vperm.xlu0 %338, %v57_v10  }
  0x16   :  { %212 = vperm.xlu1 %339, %v69_v11  }
  0x17   :  { %184 = vperm.xlu0 %338, %v65_v12  }
  0x1a   :  { %117 = vperm.xlu1 %339, %v62_v13  }
  0x1b   :  { %89 = vperm.xlu0 %338, %v58_v14   ;;  %v42_v14 = vld [vmem:[%s590_s2 + $0x18] sm:$0xff] }
  0x1e   :  { %217 = vperm.xlu1 %339, %v70_v16  }
  0x1f   :  { %189 = vperm.xlu0 %338, %v66_v17  }
  0x7d   :  { %v103_v18 = vpop.permute.xlu1 %102 }
  0x7e   :  { %v75_v19 = vpop.permute.xlu0 %74  ;;  %v120_v26 = vmul.f32 %v103_v18, %v39_v20  ;;  %v124_v27 = vmul.f32 %v103_v18, %v43_v23  ;;  %v34_v20 = vld [vmem:[%s589_s1 + $0x18] sm:$0xff] }
  0x7f   :  { %v92_v28 = vmul.f32 %v75_v19, %v31_v24  ;;  %v96_v29 = vmul.f32 %v75_v19, %v35_v25  ;;  %v46_v19 = vld [vmem:[%s590_s2 + $0x38] sm:$0xff] }
  0x81   :  { %v108_v21 = vpop.permute.xlu1 %107  ;;  %v128_v36 = vadd.f32 %v120_v26, %v92_v28  ;;  %v132_v37 = vadd.f32 %v124_v27, %v96_v29 }
  0x82   :  { %v80_v22 = vpop.permute.xlu0 %79  ;;  %v121_v40 = vmul.f32 %v108_v21, %v40_v32  ;;  %v125_v41 = vmul.f32 %v108_v21, %v44_v33  ;;  %v38_v21 = vld [vmem:[%s589_s1 + $0x38] sm:$0xff] }
  0x83   :  { %v93_v42 = vmul.f32 %v80_v22, %v32_v34  ;;  %v97_v43 = vmul.f32 %v80_v22, %v36_v35  ;;  %v137_v54 = vsel %vm136_vm1, %v128_v36, 0.0  ;;  %v150_v55 = vsel %vm136_vm1, %v132_v37, 0.0 }
  0x85   :  { %v180_v30 = vpop.permute.xlu1 %179  ;;  %v129_v56 = vadd.f32 %v121_v40, %v93_v42  ;;  %v133_v57 = vadd.f32 %v125_v41, %v97_v43  ;;  %v50_v40 = vld [vmem:[%s591_s3 + $0x18] sm:$0xff] }
  0x86   :  { %v175_v31 = vpop.permute.xlu0 %174  ;;  %v193_v4 = vmul.f32 %v180_v30, %v32_v34  ;;  %v197_v5 = vmul.f32 %v180_v30, %v36_v35  ;;  %v54_v41 = vld [vmem:[%s591_s3 + $0x38] sm:$0xff] }
  0x87   :  { %v192_v6 = vmul.f32 %v175_v31, %v31_v24  ;;  %v196_v7 = vmul.f32 %v175_v31, %v35_v25  ;;  %v138_v22 = vsel %vm136_vm1, %v129_v56, 0.0  ;;  %v151_v23 = vsel %vm136_vm1, %v133_v57, 0.0 }
  0x88   :  { %v139_v36 = vadd.f32 %v138_v22, %v137_v54  ;;  %v152_v37 = vadd.f32 %v151_v23, %v150_v55  ;;  %v71_v22 = vld [vmem:[#allocation2] sm:$0x3] }
  0x89   :  { %v208_v38 = vpop.permute.xlu1 %207 }
  0x8a   :  { %v203_v39 = vpop.permute.xlu0 %202  ;;  %v221_v58 = vmul.f32 %v208_v38, %v48_v44  ;;  %v225_v59 = vmul.f32 %v208_v38, %v52_v45 }
  0x8b   :  { %v220_v0 = vmul.f32 %v203_v39, %v47_v46  ;;  %v224_v1 = vmul.f32 %v203_v39, %v51_v49 }
  0x8c   :  { %v229_v15 = vadd.f32 %v221_v58, %v193_v4  ;;  %v233_v16 = vadd.f32 %v225_v59, %v197_v5 }
  0x8d   :  { %v113_v50 = vpop.permute.xlu1 %112  ;;  %v228_v24 = vadd.f32 %v220_v0, %v192_v6  ;;  %v232_v25 = vadd.f32 %v224_v1, %v196_v7 }
  0x8e   :  { %v85_v51 = vpop.permute.xlu0 %84  ;;  %v122_v60 = vmul.f32 %v113_v50, %v41_v47  ;;  %v126_v61 = vmul.f32 %v113_v50, %v45_v48  ;;  %v237_v38 = vsel %vm136_vm1, %v229_v15, 0.0  ;;  %v250_v39 = vsel %vm136_vm1, %v233_v16, 0.0 }
  0x8f   :  { %v94_v2 = vmul.f32 %v85_v51, %v33_v52  ;;  %v98_v3 = vmul.f32 %v85_v51, %v37_v53  ;;  %v236_v42 = vsel %vm136_vm1, %v228_v24, 0.0  ;;  %v249_v43 = vsel %vm136_vm1, %v232_v25, 0.0 }
  0x91   :  { %v213_v8 = vpop.permute.xlu1 %212  ;;  %v130_v10 = vadd.f32 %v122_v60, %v94_v2  ;;  %v134_v11 = vadd.f32 %v126_v61, %v98_v3  ;;  %v238_v60 = vadd.f32 %v237_v38, %v236_v42  ;;  %v251_v61 = vadd.f32 %v250_v39, %v249_v43 }
  0x92   :  { %v185_v9 = vpop.permute.xlu0 %184  ;;  %v222_v12 = vmul.f32 %v213_v8, %v49_v62  ;;  %v226_v13 = vmul.f32 %v213_v8, %v53_v63 }
  0x93   :  { %v194_v17 = vmul.f32 %v185_v9, %v33_v52  ;;  %v198_v18 = vmul.f32 %v185_v9, %v37_v53  ;;  %v140_v26 = vsel %vm136_vm1, %v130_v10, 0.0  ;;  %v153_v27 = vsel %vm136_vm1, %v134_v11, 0.0 }
  0x94   :  { %v141_v46 = vadd.f32 %v140_v26, %v139_v36  ;;  %v154_v47 = vadd.f32 %v153_v27, %v152_v37 }
  0x95   :  { %v230_v28 = vadd.f32 %v222_v12, %v194_v17  ;;  %v234_v29 = vadd.f32 %v226_v13, %v198_v18  ;;  %v118_v30 = vpop.permute.xlu1 %117 }
  0x96   :  { %v90_v31 = vpop.permute.xlu0 %89  ;;  %v123_v32 = vmul.f32 %v118_v30, %v42_v14  ;;  %v127_v33 = vmul.f32 %v118_v30, %v46_v19 }
  0x97   :  { %v95_v34 = vmul.f32 %v90_v31, %v34_v20  ;;  %v99_v35 = vmul.f32 %v90_v31, %v38_v21  ;;  %v239_v48 = vsel %vm136_vm1, %v230_v28, 0.0  ;;  %v252_v49 = vsel %vm136_vm1, %v234_v29, 0.0  ;;  %v271_v31 = vld [vmem:[%s592_s4] sm:$0x3]  ;;  %s394_s4 = smov [#allocation4]  }
  0x98   :  { %v240_v2 = vadd.f32 %v239_v48, %v238_v60  ;;  %v253_v3 = vadd.f32 %v252_v49, %v251_v61  ;;  %v272_v36 = vsub.f32 1.0, %v271_v31  ;;  %s312_s26 = sshll.u32 %s394_s4, 4  ;;  %s313_s26 = int_to_ptr.vmem [resolvable:$true] %s312_s26 }
  0x99   :  { %v131_v44 = vadd.f32 %v123_v32, %v95_v34  ;;  %v135_v45 = vadd.f32 %v127_v33, %v99_v35  ;;  %v218_v50 = vpop.permute.xlu1 %217  ;;  %v171_v32 = vld [vmem:[#allocation3] sm:$0x3]  ;;  %s348_s29 = scalar_lea.vmem %s313_s26, 32  ;;  %p353_p1 = scmp.lt.s32.totalorder %s313_s26, %s313_s26 }
  0x9a   :  { %v190_v51 = vpop.permute.xlu0 %189  ;;  %v223_v54 = vmul.f32 %v218_v50, %v50_v40  ;;  %v227_v55 = vmul.f32 %v218_v50, %v54_v41  ;;  %v273_v38 = vmul.f32 -1e+30, %v272_v36  ;;  %p349_p0 = scmp.ne.s32.totalorder %s313_s26, %s348_s29  ;;  %p354_p2 = scmp.lt.s32.totalorder %s348_s29, %s348_s29 }
  0x9b   :  { %v142_v52 = vsel %vm136_vm1, %v131_v44, 0.0  ;;  %v155_v53 = vsel %vm136_vm1, %v135_v45, 0.0  ;;  %v195_v58 = vmul.f32 %v190_v51, %v34_v20  ;;  %v199_v59 = vmul.f32 %v190_v51, %v38_v21 }
  0x9c   :  { %v143_v56 = vadd.f32 %v142_v52, %v141_v46  ;;  %v156_v57 = vadd.f32 %v155_v53, %v154_v47  ;;  %p355_p3 = por %p354_p2, %p353_p1 }
  0x9d   :  { %v231_v0 = vadd.f32 %v223_v54, %v195_v58  ;;  %v235_v1 = vadd.f32 %v227_v55, %v199_v59 }
  0x9e   :  { %v144_v62 = vrot.slane %v143_v56, 4  ;;  %v157_v63 = vrot.slane %v156_v57, 4  ;;  %p356_p4 = pnand %p355_p3, %p349_p0 }
  0x9f   :  { %v241_v6 = vsel %vm136_vm1, %v231_v0, 0.0  ;;  %v254_v7 = vsel %vm136_vm1, %v235_v1, 0.0 }
  0xa0   :  { %v145_v4 = vadd.f32 %v144_v62, %v143_v56  ;;  %v158_v5 = vadd.f32 %v157_v63, %v156_v57  ;;  %v242_v8 = vadd.f32 %v241_v6, %v240_v2  ;;  %v255_v9 = vadd.f32 %v254_v7, %v253_v3 }
  0xa2   :  { %v146_v10 = vrot.slane %v145_v4, 2  ;;  %v159_v11 = vrot.slane %v158_v5, 2  ;;  %v243_v12 = vrot.slane %v242_v8, 4  ;;  %v256_v13 = vrot.slane %v255_v9, 4 }
  0xa4   :  { %v147_v14 = vadd.f32 %v146_v10, %v145_v4  ;;  %v160_v15 = vadd.f32 %v159_v11, %v158_v5  ;;  %v244_v16 = vadd.f32 %v243_v12, %v242_v8  ;;  %v257_v17 = vadd.f32 %v256_v13, %v255_v9 }
  0xa6   :  { %v148_v18 = vrot.slane %v147_v14, 1  ;;  %v161_v19 = vrot.slane %v160_v15, 1  ;;  %v245_v20 = vrot.slane %v244_v16, 2  ;;  %v258_v21 = vrot.slane %v257_v17, 2 }
  0xa8   :  { %v149_v23 = vadd.f32 %v148_v18, %v147_v14  ;;  %v162_v24 = vadd.f32 %v161_v19, %v160_v15  ;;  %v246_v25 = vadd.f32 %v245_v20, %v244_v16  ;;  %v259_v26 = vadd.f32 %v258_v21, %v257_v17 }
  0xaa   :  { %v166_v27 = vsel %vm165_vm2, %v162_v24, %v149_v23  ;;  %v247_v29 = vrot.slane %v246_v25, 1  ;;  %v260_v30 = vrot.slane %v259_v26, 1 }
  0xab   :  { %v168_v28 = vadd.f32 %v166_v27, %v71_v22 }
  0xac   :  { %v248_v33 = vadd.f32 %v247_v29, %v246_v25  ;;  %v261_v34 = vadd.f32 %v260_v30, %v259_v26 }
  0xad   :  { %170 = vst.msk [vmem:[#allocation2] sm:$0x3] %vm28_vm0, %v168_v28 }
  0xae   :  { %v264_v35 = vsel %vm165_vm2, %v261_v34, %v248_v33 }
  0xaf   :  { %v266_v37 = vadd.f32 %v264_v35, %v171_v32 }
  0xb1   :  { %267 = vst.msk [vmem:[#allocation3] sm:$0x3] %vm28_vm0, %v266_v37 }
  0xb4   :  { %v274_v39 = vld [vmem:[#allocation2] sm:$0x3] }
  0xb5   :  { %v275_v40 = vmul.f32 %v274_v39, %v271_v31 }
  0xb7   :  { %v276_v41 = vadd.f32 %v275_v40, %v273_v38 }
  0xb8   :  { %v277_v43 = vld [vmem:[#allocation3] sm:$0x3] }
  0xb9   :  { %v280_v42 = vsel %vm28_vm0, %v276_v41, -inf  ;;  %v278_v44 = vmul.f32 %v277_v43, %v271_v31 }
  0xba   :  { %281 = vmax.xlane.f32.xlu0 %v280_v42 }
  0xbb   :  { %v279_v45 = vadd.f32 %v278_v44, %v273_v38 }
  0xbd   :  { %v293_v46 = vsel %vm28_vm0, %v279_v45, -inf }
  0xbe   :  { %294 = vmax.xlane.f32.xlu1 %v293_v46 }
 0x143   :  { %v282_v47 = vpop.xlane.xlu0 %281 }
 0x144   :  { %v283_v48 = vsub.f32 %v276_v41, %v282_v47 }
 0x146   :  { %v284_v49 = vmul.f32 1.442695, %v283_v48 }
 0x147   :  { %v295_v50 = vpop.xlane.xlu1 %294 }
 0x148   :  { %340 = vpow2.f32 %v284_v49  ;;  %v296_v51 = vsub.f32 %v279_v45, %v295_v50 }
 0x14a   :  { %v297_v52 = vmul.f32 1.442695, %v296_v51 }
 0x14c   :  { %342 = vpow2.f32 %v297_v52 }
 0x155   :  { %v341_v53 = vpop.eup %340 }
 0x156   :  { %v286_v54 = vsel %vm28_vm0, %v341_v53, 0.0 }
 0x157   :  { %287 = vadd.xlane.f32.xlu0 %v286_v54 }
 0x159   :  { %v343_v55 = vpop.eup %342 }
 0x15a   :  { %v299_v56 = vsel %vm28_vm0, %v343_v55, 0.0 }
 0x15b   :  { %300 = vadd.xlane.f32.xlu0 %v299_v56 }
 0x1e0   :  { %v288_v57 = vpop.xlane.xlu0 %287 }
 0x1e1   :  { %344 = vlog2.f32 %v288_v57 }
 0x1e4   :  { %v301_v58 = vpop.xlane.xlu0 %300 }
 0x1e5   :  { %346 = vlog2.f32 %v301_v58 }
 0x1ee   :  { %v345_v59 = vpop.eup %344 }
 0x1ef   :  { %v290_v60 = vmul.f32 0.6931472, %v345_v59 }
 0x1f1   :  { %v291_v61 = vsub.f32 %v283_v48, %v290_v60 }
 0x1f2   :  { %v347_v62 = vpop.eup %346 }
 0x1f3   :  { %292 = vst.msk [vmem:[#allocation4] sm:$0x3] %vm28_vm0, %v291_v61  ;;  %v303_v63 = vmul.f32 0.6931472, %v347_v62 }
 0x1f4   :  { %359 = shalt.err (!%p356_p4)
}
 0x1f5   :  { %315 = dma.vmem_to_hbm [thread:$0]  %s313_s26, 32, %s593_s5, [#allocation5]   ;;  %v304_v0 = vsub.f32 %v296_v51, %v303_v63 }
 0x1f6   :  { %s368_s8 = scalar_lea.vmem %s323_s28, 32  ;;  %p373_p6 = scmp.lt.s32.totalorder %s323_s28, %s323_s28 }
 0x1f7   :  { %305 = vst.msk [vmem:[#allocation6] sm:$0x3] %vm28_vm0, %v304_v0  ;;  %p369_p5 = scmp.ne.s32.totalorder %s323_s28, %s368_s8  ;;  %p374_p7 = scmp.lt.s32.totalorder %s368_s8, %s368_s8 }
 0x1f9   :  { %p375_p8 = por %p374_p7, %p373_p6 }
 0x1fb   :  { %p376_p9 = pnand %p375_p8, %p369_p5 }
 0x1fd   :  { %379 = shalt.err (!%p376_p9)
}
 0x1fe   :  { %325 = dma.vmem_to_hbm [thread:$0]  %s323_s28, 32, %s594_s6, [#allocation7]  }
 0x1ff   :  { %388 = dma.done.wait [#allocation5], 32  }
 0x200   :  { %389 = vsyncadd [#allocation5], 4294967264 }
 0x201   :  { %390 = dma.done.wait [#allocation7], 32  }
 0x202   :  { %391 = vsyncadd [#allocation7], 4294967264 }
 0x203   :  { %332 = vsyncpa [#allocation5], 1 }
 0x204   :  { %333 = vsyncpa [#allocation7], 1 }

</bundles_post_ra>
